<compile_context>
chip_gen: v5e
topology: v5e:2x2
jax: 0.10.0
libtpu: 0.0.40
codegen_flags: <defaults>
</compile_context>

<pallas_src>
import math

import jax
import jax.numpy as jnp
from jax.experimental import pallas as pl
from jax.experimental.pallas import tpu as pltpu


def _gaussian_mlp_kernel(xT_ref, w1_ref, b1_ref, w2_ref, b2_ref, w3_ref, b3_ref,
                         meanT_ref):
    """Transposed MLP: batch lives on the lane (last) axis.

    xT     [S,   Bt]   (states^T tile, Bt = batch tile, multiple of 128)
    wN     [out, in]   (PyTorch nn.Linear weight layout)
    bN     [out, 1 ]
    meanT  [A,   Bt]
    """
    hp = jax.lax.Precision.HIGHEST          # true f32 matmul passes on the MXU
    x = xT_ref[...].astype(jnp.float32)
    h1 = jnp.tanh(
        jnp.dot(w1_ref[...], x, preferred_element_type=jnp.float32, precision=hp)
        + b1_ref[...])
    h2 = jnp.tanh(
        jnp.dot(w2_ref[...], h1, preferred_element_type=jnp.float32, precision=hp)
        + b2_ref[...])
    mean = (
        jnp.dot(w3_ref[...], h2, preferred_element_type=jnp.float32, precision=hp)
        + b3_ref[...])
    meanT_ref[...] = mean.astype(meanT_ref.dtype)


def _round_up(x, m):
    return ((x + m - 1) // m) * m


def _choose_batch_tiling(B, block_b):
    """Returns (padded_batch, batch_tile); tile is a multiple of 128 and keeps
    >=2 grid steps when the batch is large enough (v7x megacore)."""
    block_b = max(128, (block_b // 128) * 128)
    Bp = _round_up(B, 128)
    if Bp <= block_b:
        return Bp, Bp                                   # single lane-dense tile
    tile = min(block_b, _round_up(pl.cdiv(Bp, 2), 128))
    return _round_up(B, tile), tile


def gaussian_mlp_policy_forward(states, params, *, min_std=1e-6, max_std=None,
                                block_b=1024, io_dtype=jnp.float32):
    """Returns (mean, log_std), each of shape [B, action_dim] (float32)."""
    w1, b1, w2, b2, w3, b3, log_std_param = params
    B, S = states.shape
    A, H2 = w3.shape
    H1 = w1.shape[0]

    Bp, tile = _choose_batch_tiling(B, block_b)

    # Batch onto the lane axis; pad only the remainder (fused with transpose).
    xT = jnp.transpose(states).astype(io_dtype)          # [S, B]
    if Bp != B:
        xT = jnp.pad(xT, ((0, 0), (0, Bp - B)))

    def _fixed(shape):
        # Small resident full-array block, same block every grid step.
        return pl.BlockSpec(shape, lambda i: (0, 0))

    grid = (Bp // tile,)
    meanT = pl.pallas_call(
        _gaussian_mlp_kernel,
        out_shape=jax.ShapeDtypeStruct((A, Bp), io_dtype),
        grid_spec=pltpu.PrefetchScalarGridSpec(
            num_scalar_prefetch=0,
            grid=grid,
            in_specs=[
                pl.BlockSpec((S, tile), lambda i: (0, i)),   # states^T tile
                _fixed((H1, S)), _fixed((H1, 1)),            # layer 1
                _fixed((H2, H1)), _fixed((H2, 1)),           # layer 2
                _fixed((A, H2)), _fixed((A, 1)),             # output layer
            ],
            out_specs=pl.BlockSpec((A, tile), lambda i: (0, i)),
        ),
        compiler_params=pltpu.CompilerParams(
            dimension_semantics=("parallel",)),
    )(xT, w1, b1, w2, b2, w3, b3)

    mean = jnp.transpose(meanT[:, :B]).astype(jnp.float32)

    # log_std is a per-call constant: clamp + lazy broadcast in the wrapper.
    ls = jnp.maximum(log_std_param.astype(jnp.float32), math.log(min_std))
    if max_std is not None:
        ls = jnp.minimum(ls, math.log(max_std))
    log_std = jnp.broadcast_to(ls.reshape(1, A), (B, A))
    return mean, log_std


def init_params(key, state_dim, action_dim, units=(8, 8), init_std=1.0):
    """Xavier-uniform weights (PyTorch [out, in] layout), zero biases,
    log_std parameter = log(init_std)."""
    def xavier(k, fan_out, fan_in):
        bound = math.sqrt(6.0 / (fan_in + fan_out))
        return jax.random.uniform(k, (fan_out, fan_in), jnp.float32,
                                  minval=-bound, maxval=bound)

    k1, k2, k3 = jax.random.split(key, 3)
    h1, h2 = units
    w1 = xavier(k1, h1, state_dim)
    b1 = jnp.zeros((h1, 1), jnp.float32)
    w2 = xavier(k2, h2, h1)
    b2 = jnp.zeros((h2, 1), jnp.float32)
    w3 = xavier(k3, action_dim, h2)
    b3 = jnp.zeros((action_dim, 1), jnp.float32)
    log_std = jnp.full((action_dim,), math.log(init_std), jnp.float32)
    return (w1, b1, w2, b2, w3, b3, log_std)


def _reference_forward(states, params, min_std=1e-6, max_std=None):
    w1, b1, w2, b2, w3, b3, log_std = params
    hp = jax.lax.Precision.HIGHEST
    h1 = jnp.tanh(jnp.dot(states, w1.T, precision=hp) + b1.T)
    h2 = jnp.tanh(jnp.dot(h1, w2.T, precision=hp) + b2.T)
    mean = jnp.dot(h2, w3.T, precision=hp) + b3.T
    ls = jnp.maximum(log_std, math.log(min_std))
    if max_std is not None:
        ls = jnp.minimum(ls, math.log(max_std))
    return mean, jnp.broadcast_to(ls.reshape(1, -1), mean.shape)


if __name__ == "__main__":
    key = jax.random.PRNGKey(0)
    k_param, k_state1, k_state2 = jax.random.split(key, 3)

    state_dim, action_dim = 16, 4
    params = init_params(k_param, state_dim, action_dim, units=(8, 8),
                         init_std=1.0)

    # Small batch (single padded tile).
    batch = 8
    states = jax.random.normal(k_state1, (batch, state_dim), jnp.float32)
    mean, log_std = gaussian_mlp_policy_forward(states, params)
    mean = jax.block_until_ready(mean)
    log_std = jax.block_until_ready(log_std)
    ref_mean, ref_log_std = _reference_forward(states, params)
    assert mean.shape == (batch, action_dim)
    assert log_std.shape == (batch, action_dim)
    assert jnp.allclose(mean, ref_mean, atol=1e-5, rtol=1e-5)
    assert jnp.allclose(log_std, ref_log_std, atol=1e-6, rtol=1e-6)

    # Ragged batch exercising padding + a multi-step (megacore-friendly) grid.
    batch2 = 300
    states2 = jax.random.normal(k_state2, (batch2, state_dim), jnp.float32)
    mean2, log_std2 = gaussian_mlp_policy_forward(states2, params, block_b=256)
    mean2 = jax.block_until_ready(mean2)
    ref_mean2, ref_log_std2 = _reference_forward(states2, params)
    assert mean2.shape == (batch2, action_dim)
    assert jnp.allclose(mean2, ref_mean2, atol=1e-5, rtol=1e-5)
    assert jnp.allclose(log_std2, ref_log_std2, atol=1e-6, rtol=1e-6)

    # TODO(synk): dist.sample() (stochastic Normal sampling in get_actions) is
    # not part of the deterministic forward hot path and is left to host JAX.
    print("KERNEL_OK")
</pallas_src>

<mosaic_0001>
module attributes {stable_mosaic.version = 11 : i64} {
  func.func @_gaussian_mlp_kernel(%arg0: i32, %arg1: memref<16x128xf32, #tpu.memory_space<vmem>>, %arg2: memref<8x16xf32, #tpu.memory_space<vmem>>, %arg3: memref<8x1xf32, #tpu.memory_space<vmem>>, %arg4: memref<8x8xf32, #tpu.memory_space<vmem>>, %arg5: memref<8x1xf32, #tpu.memory_space<vmem>>, %arg6: memref<4x8xf32, #tpu.memory_space<vmem>>, %arg7: memref<4x1xf32, #tpu.memory_space<vmem>>, %arg8: memref<4x128xf32, #tpu.memory_space<vmem>>) attributes {dimension_semantics = [#tpu.dimension_semantics<parallel>], iteration_bounds = array<i64: 1>, scalar_prefetch = 0 : i64, scratch_operands = 0 : i64, tpu.core_type = #tpu.core_type<tc>, window_params = [{transform_indices = @transform_0, window_bounds = array<i64: 16, 128>}, {pipeline_mode = #tpu.pipeline_mode<synchronous>, transform_indices = @transform_1, window_bounds = array<i64: 8, 16>}, {pipeline_mode = #tpu.pipeline_mode<synchronous>, transform_indices = @transform_2, window_bounds = array<i64: 8, 1>}, {pipeline_mode = #tpu.pipeline_mode<synchronous>, transform_indices = @transform_3, window_bounds = array<i64: 8, 8>}, {pipeline_mode = #tpu.pipeline_mode<synchronous>, transform_indices = @transform_4, window_bounds = array<i64: 8, 1>}, {pipeline_mode = #tpu.pipeline_mode<synchronous>, transform_indices = @transform_5, window_bounds = array<i64: 4, 8>}, {pipeline_mode = #tpu.pipeline_mode<synchronous>, transform_indices = @transform_6, window_bounds = array<i64: 4, 1>}, {transform_indices = @transform_7, window_bounds = array<i64: 4, 128>}]} {
    %c0 = arith.constant 0 : index
    %c0_0 = arith.constant 0 : index
    %0 = vector.load %arg1[%c0, %c0_0] : memref<16x128xf32, #tpu.memory_space<vmem>>, vector<16x128xf32>
    %c0_1 = arith.constant 0 : index
    %c0_2 = arith.constant 0 : index
    %1 = vector.load %arg2[%c0_1, %c0_2] : memref<8x16xf32, #tpu.memory_space<vmem>>, vector<8x16xf32>
    %cst = arith.constant dense<0.000000e+00> : vector<8x128xf32>
    %2 = tpu.matmul %1, %0, %cst {dimension_numbers = #tpu.dot_dimension_numbers<[1], [0], [0], [1], [0, 0, 1, 1], [], []>, precision = #tpu.contract_precision<fp32>} : vector<8x16xf32>, vector<16x128xf32>, vector<8x128xf32> -> vector<8x128xf32>
    %c0_3 = arith.constant 0 : index
    %c0_4 = arith.constant 0 : index
    %3 = vector.load %arg3[%c0_3, %c0_4] : memref<8x1xf32, #tpu.memory_space<vmem>>, vector<8x1xf32>
    %4 = vector.broadcast %3 : vector<8x1xf32> to vector<8x128xf32>
    %5 = arith.addf %2, %4 : vector<8x128xf32>
    %6 = math.tanh %5 : vector<8x128xf32>
    %c0_5 = arith.constant 0 : index
    %c0_6 = arith.constant 0 : index
    %7 = vector.load %arg4[%c0_5, %c0_6] : memref<8x8xf32, #tpu.memory_space<vmem>>, vector<8x8xf32>
    %cst_7 = arith.constant dense<0.000000e+00> : vector<8x128xf32>
    %8 = tpu.matmul %7, %6, %cst_7 {dimension_numbers = #tpu.dot_dimension_numbers<[1], [0], [0], [1], [0, 0, 1, 1], [], []>, precision = #tpu.contract_precision<fp32>} : vector<8x8xf32>, vector<8x128xf32>, vector<8x128xf32> -> vector<8x128xf32>
    %c0_8 = arith.constant 0 : index
    %c0_9 = arith.constant 0 : index
    %9 = vector.load %arg5[%c0_8, %c0_9] : memref<8x1xf32, #tpu.memory_space<vmem>>, vector<8x1xf32>
    %10 = vector.broadcast %9 : vector<8x1xf32> to vector<8x128xf32>
    %11 = arith.addf %8, %10 : vector<8x128xf32>
    %12 = math.tanh %11 : vector<8x128xf32>
    %c0_10 = arith.constant 0 : index
    %c0_11 = arith.constant 0 : index
    %13 = vector.load %arg6[%c0_10, %c0_11] : memref<4x8xf32, #tpu.memory_space<vmem>>, vector<4x8xf32>
    %cst_12 = arith.constant dense<0.000000e+00> : vector<4x128xf32>
    %14 = tpu.matmul %13, %12, %cst_12 {dimension_numbers = #tpu.dot_dimension_numbers<[1], [0], [0], [1], [0, 0, 1, 1], [], []>, precision = #tpu.contract_precision<fp32>} : vector<4x8xf32>, vector<8x128xf32>, vector<4x128xf32> -> vector<4x128xf32>
    %c0_13 = arith.constant 0 : index
    %c0_14 = arith.constant 0 : index
    %15 = vector.load %arg7[%c0_13, %c0_14] : memref<4x1xf32, #tpu.memory_space<vmem>>, vector<4x1xf32>
    %16 = vector.broadcast %15 : vector<4x1xf32> to vector<4x128xf32>
    %17 = arith.addf %14, %16 : vector<4x128xf32>
    %c0_15 = arith.constant 0 : index
    %c0_16 = arith.constant 0 : index
    %18 = vector.load %arg8[%c0_15, %c0_16] : memref<4x128xf32, #tpu.memory_space<vmem>>, vector<4x128xf32>
    tpu.vector_store %arg8[%c0_15, %c0_16], %17 {strides = array<i32>} : memref<4x128xf32, #tpu.memory_space<vmem>>, vector<4x128xf32>,
    return
  }
  func.func @transform_0(%arg0: i32) -> (i32, i32) {
    %c0_i32 = arith.constant 0 : i32
    %c0_i32_0 = arith.constant 0 : i32
    return %c0_i32, %arg0 : i32, i32
  }
  func.func @transform_1(%arg0: i32) -> (i32, i32) {
    %c0_i32 = arith.constant 0 : i32
    %c0_i32_0 = arith.constant 0 : i32
    %c0_i32_1 = arith.constant 0 : i32
    return %c0_i32, %c0_i32_0 : i32, i32
  }
  func.func @transform_2(%arg0: i32) -> (i32, i32) {
    %c0_i32 = arith.constant 0 : i32
    %c0_i32_0 = arith.constant 0 : i32
    %c0_i32_1 = arith.constant 0 : i32
    return %c0_i32, %c0_i32_0 : i32, i32
  }
  func.func @transform_3(%arg0: i32) -> (i32, i32) {
    %c0_i32 = arith.constant 0 : i32
    %c0_i32_0 = arith.constant 0 : i32
    %c0_i32_1 = arith.constant 0 : i32
    return %c0_i32, %c0_i32_0 : i32, i32
  }
  func.func @transform_4(%arg0: i32) -> (i32, i32) {
    %c0_i32 = arith.constant 0 : i32
    %c0_i32_0 = arith.constant 0 : i32
    %c0_i32_1 = arith.constant 0 : i32
    return %c0_i32, %c0_i32_0 : i32, i32
  }
  func.func @transform_5(%arg0: i32) -> (i32, i32) {
    %c0_i32 = arith.constant 0 : i32
    %c0_i32_0 = arith.constant 0 : i32
    %c0_i32_1 = arith.constant 0 : i32
    return %c0_i32, %c0_i32_0 : i32, i32
  }
  func.func @transform_6(%arg0: i32) -> (i32, i32) {
    %c0_i32 = arith.constant 0 : i32
    %c0_i32_0 = arith.constant 0 : i32
    %c0_i32_1 = arith.constant 0 : i32
    return %c0_i32, %c0_i32_0 : i32, i32
  }
  func.func @transform_7(%arg0: i32) -> (i32, i32) {
    %c0_i32 = arith.constant 0 : i32
    %c0_i32_0 = arith.constant 0 : i32
    return %c0_i32, %arg0 : i32, i32
  }
}

</mosaic_0001>

<bundles_post_ra>
// kernel: tpu_custom_call.1
= control target key start
LH: loop header
LB: loop body
LE: loop exit
PB: predicated region body
PF: predicated region fallthrough
CT: control target
= control target key end

     0   :  { %12 = vsyncpa [#allocation3], 0  ;;  %s722_s0 = inlined_call_operand.vmem [shape: f32[16,128], index: 0, kind: input, shape index: {}]   ;;  %s723_s1 = inlined_call_operand.hbm [shape: f32[8,16], index: 1, kind: input, shape index: {}]   ;;  %s724_s2 = inlined_call_operand.vmem [shape: f32[8,1], index: 2, kind: input, shape index: {}]   ;;  %s725_s3 = inlined_call_operand.hbm [shape: f32[8,8], index: 3, kind: input, shape index: {}]   ;;  %s726_s4 = inlined_call_operand.vmem [shape: f32[8,1], index: 4, kind: input, shape index: {}]   ;;  %s727_s5 = inlined_call_operand.vmem [shape: f32[4,8], index: 5, kind: input, shape index: {}]   ;;  %s728_s6 = inlined_call_operand.vmem [shape: f32[4,1], index: 6, kind: input, shape index: {}]   ;;  %s729_s7 = inlined_call_operand.hbm [shape: f32[4,128], index: 7, kind: output, shape index: {}]  }
   0x1   :  { %13 = vsyncpa [#allocation6], 0 }
   0x2   :  { %14 = vsyncpa [#allocation4], 0  ;;  %s22_s26 = sshll.u32 %s723_s1, 4  ;;  %s649_s27 = smov [#allocation2]   ;;  %s23_s26 = int_to_ptr.hbm [resolvable:$true] %s22_s26 }
   0x3   :  { %s24_s28 = sshll.u32 %s649_s27, 4  ;;  %s35_s8 = sshll.u32 %s725_s3, 4  ;;  %s25_s28 = int_to_ptr.vmem [resolvable:$true] %s24_s28  ;;  %s36_s8 = int_to_ptr.hbm [resolvable:$true] %s35_s8 }
   0x4   :  { %27 = dma.hbm_to_vmem [thread:$0]  %s23_s26, 128, %s25_s28, [#allocation3]  }
   0x5   :  { %s650_s9 = smov [#allocation5]  }
   0x6   :  { %s37_s10 = sshll.u32 %s650_s9, 4  ;;  %s38_s10 = int_to_ptr.vmem [resolvable:$true] %s37_s10 }
   0x7   :  { %40 = dma.hbm_to_vmem [thread:$0]  %s36_s8, 128, %s38_s10, [#allocation6]  }
   0x8   :  { %643 = dma.done.wait [#allocation3], 128  }
   0x9   :  { %644 = vsyncadd [#allocation3], 4294967168 }
   0xa   :  { %645 = dma.done.wait [#allocation6], 128  }
   0xb   :  { %646 = vsyncadd [#allocation6], 4294967168  ;;  %v651_v0 = vmov 0   ;;  %vm64_vm0 = vcmask 130048   ;;  %v56_v1 = vld [vmem:[%s722_s0 + $0x8] sm:$0xff]  ;;  %v55_v2 = vld [vmem:[%s722_s0] sm:$0xff] }
   0xc   :  { %565 = vset.pattern.permute.xlu0 %v651_v0  ;;  %566 = vset.pattern.permute.xlu1 %v651_v0  ;;  %v57_v3 = vld [vmem:[#allocation2] sm:$0xff]  ;;  %v82_v4 = vand.u32 4294901760, %v56_v1  ;;  %v84_v5 = vand.u32 4294901760, %v55_v2  ;;  %v228_v22 = vld [vmem:[#allocation5] sm:$0xff]  ;;  %vm235_vm1 = vcmask 64512   ;;  %s550_s20 = sshll.u32 %s729_s7, 4  ;;  %s551_s20 = int_to_ptr.hbm [resolvable:$true] %s550_s20 }
   0xd   :  { %v66_v6 = vsel %vm64_vm0, %v57_v3, 0  ;;  %v58_v7 = vld [vmem:[%s724_s2] sm:$0xff]  ;;  %v237_v25 = vsel %vm235_vm1, %v228_v22, 0 }
   0xe   :  { %v86_v8 = vand.u32 4294901760, %v66_v6  ;;  %61 = vperm.xlu0 %565, %v58_v7   ;;  %v110_v9 = vsub.f32 %v56_v1, %v82_v4  ;;  %83 = vmatpush.msra.mxu0 %v82_v4  ;;  %v116_v10 = vsub.f32 %v55_v2, %v84_v5  ;;  %v229_v17 = vld [vmem:[%s726_s4] sm:$0xff]  ;;  %v256_v30 = vand.u32 4294901760, %v237_v25 }
   0xf   :  { %167 = vmatpush.msra.mxu3 %v82_v4  ;;  %v386_v48 = vld [vmem:[%s727_s5] sm:$0xf]  ;;  %s652_s5 = smov [#allocation7]  }
  0x10   :  { %v87_v11 = vsub.f32 %v66_v6, %v86_v8  ;;  %142 = vmatpush.msra.mxu2 %v110_v9  ;;  %85 = vmatpush.msra.mxu0 %v84_v5  ;;  %v111_v12 = vand.u32 4294901760, %v110_v9  ;;  %v117_v13 = vand.u32 4294901760, %v116_v10  ;;  %v257_v34 = vsub.f32 %v237_v25, %v256_v30  ;;  %v387_v62 = vld [vmem:[%s728_s6] sm:$0xf]  ;;  %s548_s6 = sshll.u32 %s652_s5, 4  ;;  %s549_s6 = int_to_ptr.vmem [resolvable:$true] %s548_s6 }
  0x11   :  { %169 = vmatpush.msra.mxu3 %v84_v5  ;;  %v394_v51 = vsel %vm235_vm1, %v386_v48, 0  ;;  %390 = vperm.xlu1 %566, %v387_v62  }
  0x12   :  { %v88_v14 = vand.u32 4294901760, %v87_v11  ;;  %145 = vmatpush.msra.mxu2 %v116_v10  ;;  %v112_v15 = vsub.f32 %v110_v9, %v111_v12  ;;  %v118_v16 = vsub.f32 %v116_v10, %v117_v13  ;;  %194 = vmatpush.msrb.mxu0 %v111_v12  ;;  %v258_v39 = vand.u32 4294901760, %v257_v34 }
  0x13   :  { %148 = vmatmul.f32.vlgmr.msra.gmra.mxu2 %v87_v11  ;;  %v413_v56 = vand.u32 4294901760, %v394_v51 }
  0x14   :  { %v89_v18 = vsub.f32 %v87_v11, %v88_v14  ;;  %173 = vmatmul.f32.vlgmr.msra.gmra.mxu3 %v88_v14  ;;  %v113_v19 = vand.u32 4294901760, %v112_v15  ;;  %v119_v20 = vand.u32 4294901760, %v118_v16  ;;  %198 = vmatpush.msrb.mxu0 %v117_v13  ;;  %v259_v40 = vsub.f32 %v257_v34, %v258_v39 }
  0x15   :  { %v414_v61 = vsub.f32 %v394_v51, %v413_v56 }
  0x16   :  { %v90_v21 = vand.u32 4294901760, %v89_v18  ;;  %232 = vperm.xlu0 %565, %v229_v17   ;;  %114 = vmatpush.msra.mxu1 %v113_v19  ;;  %v260_v42 = vand.u32 4294901760, %v259_v40 }
  0x17   :  { %v415_v2 = vand.u32 4294901760, %v414_v61 }
  0x18   :  { %91 = vmatmul.f32.vlgmr.msra.gmra.mxu0 %v90_v21  ;;  %120 = vmatpush.msra.mxu1 %v119_v20 }
  0x19   :  { %122 = vmatmul.f32.vlgmr.msra.gmra.mxu1 %v86_v8  ;;  %v416_v3 = vsub.f32 %v414_v61, %v415_v2 }
  0x1a   :  { %219 = vmatpush.msrb.mxu1 %v82_v4 }
  0x1c   :  { %221 = vmatpush.msrb.mxu1 %v84_v5  ;;  %v417_v5 = vand.u32 4294901760, %v416_v3 }
  0x20   :  { %200 = vmatmul.f32.vlgmr.msrb.gmra.mxu0 %v86_v8 }
  0x21   :  { %223 = vmatmul.f32.vlgmr.msrb.gmra.mxu1 %v86_v8 }
  0x80   :  { %v62_v23 = vpop.permute.xlu0 %61 }
  0x83   :  { %v391_v11 = vpop.permute.xlu1 %390 }
  0x88   :  { %v233_v50 = vpop.permute.xlu0 %232 }
  0x95   :  { %v92_v24 = vpop.f32.mrf.mxu0 }
  0x96   :  { %v93_v26 = vadd.f32 %v92_v24, %v62_v23  ;;  %v123_v27 = vpop.f32.mrf.mxu1  ;;  %v149_v28 = vpop.f32.mrf.mxu2 }
  0x97   :  { %v174_v31 = vpop.f32.mrf.mxu3 }
  0x98   :  { %v124_v29 = vadd.f32 %v123_v27, %v93_v26 }
  0x9a   :  { %v150_v32 = vadd.f32 %v149_v28, %v124_v29 }
  0x9c   :  { %v175_v33 = vadd.f32 %v174_v31, %v150_v32 }
  0x9d   :  { %v201_v35 = vpop.f32.mrf.mxu0 }
  0x9e   :  { %v202_v36 = vadd.f32 %v201_v35, %v175_v33  ;;  %v224_v37 = vpop.f32.mrf.mxu1 }
  0xa0   :  { %v225_v38 = vadd.f32 %v224_v37, %v202_v36 }
  0xa2   :  { %567 = vtanh.f32 %v225_v38 }
  0xa8   :  { %v568_v41 = vpop.eup %567 }
  0xa9   :  { %v254_v43 = vand.u32 4294901760, %v568_v41 }
  0xab   :  { %255 = vmatpush.msrb.mxu2 %v254_v43  ;;  %331 = vmatpush.msra.mxu1 %v254_v43  ;;  %v281_v44 = vsub.f32 %v568_v41, %v254_v43 }
  0xac   :  { %261 = vmatmul.f32.vlgmr.msrb.gmra.mxu2 %v260_v42  ;;  %335 = vmatmul.f32.vlgmr.msra.gmra.mxu1 %v258_v39 }
  0xad   :  { %308 = vmatpush.msra.mxu0 %v281_v44  ;;  %v282_v45 = vand.u32 4294901760, %v281_v44 }
  0xae   :  { %311 = vmatmul.f32.vlgmr.msra.gmra.mxu0 %v257_v34 }
  0xaf   :  { %357 = vmatpush.msra.mxu2 %v282_v45  ;;  %v283_v46 = vsub.f32 %v281_v44, %v282_v45 }
  0xb1   :  { %v284_v47 = vand.u32 4294901760, %v283_v46 }
  0xb3   :  { %285 = vmatpush.msrb.mxu3 %v284_v47 }
  0xb4   :  { %287 = vmatmul.f32.vlgmr.msrb.gmra.mxu3 %v256_v30  ;;  %359 = vmatmul.f32.vlgmr.msra.gmra.mxu2 %v256_v30 }
  0xb5   :  { %379 = vmatpush.msra.mxu3 %v254_v43 }
  0xbc   :  { %381 = vmatmul.f32.vlgmr.msra.gmra.mxu3 %v256_v30 }
 0x129   :  { %v336_v57 = vpop.f32.mrf.mxu1 }
 0x12b   :  { %v312_v54 = vpop.f32.mrf.mxu0 }
 0x12f   :  { %v262_v49 = vpop.f32.mrf.mxu2 }
 0x130   :  { %v263_v52 = vadd.f32 %v262_v49, %v233_v50 }
 0x137   :  { %v288_v53 = vpop.f32.mrf.mxu3  ;;  %v360_v59 = vpop.f32.mrf.mxu2 }
 0x138   :  { %v289_v55 = vadd.f32 %v288_v53, %v263_v52 }
 0x13a   :  { %v313_v58 = vadd.f32 %v312_v54, %v289_v55 }
 0x13c   :  { %v337_v60 = vadd.f32 %v336_v57, %v313_v58 }
 0x13e   :  { %v361_v63 = vadd.f32 %v360_v59, %v337_v60 }
 0x13f   :  { %v382_v0 = vpop.f32.mrf.mxu3 }
 0x140   :  { %v383_v1 = vadd.f32 %v382_v0, %v361_v63 }
 0x142   :  { %569 = vtanh.f32 %v383_v1 }
 0x148   :  { %v570_v4 = vpop.eup %569 }
 0x149   :  { %v411_v6 = vand.u32 4294901760, %v570_v4 }
 0x14b   :  { %412 = vmatpush.msrb.mxu0 %v411_v6  ;;  %488 = vmatpush.msrb.mxu3 %v411_v6  ;;  %v438_v7 = vsub.f32 %v570_v4, %v411_v6 }
 0x14c   :  { %418 = vmatmul.f32.vlgmr.msrb.gmra.mxu0 %v417_v5  ;;  %492 = vmatmul.f32.vlgmr.msrb.gmra.mxu3 %v415_v2 }
 0x14d   :  { %465 = vmatpush.msrb.mxu2 %v438_v7  ;;  %v439_v8 = vand.u32 4294901760, %v438_v7 }
 0x14e   :  { %468 = vmatmul.f32.vlgmr.msrb.gmra.mxu2 %v414_v61 }
 0x14f   :  { %514 = vmatpush.msra.mxu0 %v439_v8  ;;  %v440_v9 = vsub.f32 %v438_v7, %v439_v8 }
 0x151   :  { %v441_v10 = vand.u32 4294901760, %v440_v9 }
 0x153   :  { %442 = vmatpush.msrb.mxu1 %v441_v10 }
 0x154   :  { %516 = vmatmul.f32.vlgmr.msra.gmra.mxu0 %v413_v56  ;;  %444 = vmatmul.f32.vlgmr.msrb.gmra.mxu1 %v413_v56 }
 0x155   :  { %536 = vmatpush.msra.mxu1 %v411_v6 }
 0x15c   :  { %538 = vmatmul.f32.vlgmr.msra.gmra.mxu1 %v413_v56 }
 0x1c9   :  { %v419_v12 = vpop.f32.mrf.mxu0 }
 0x1ca   :  { %v420_v13 = vadd.f32 %v419_v12, %v391_v11 }
 0x1cf   :  { %v493_v17 = vpop.f32.mrf.mxu3 }
 0x1d1   :  { %v445_v14 = vpop.f32.mrf.mxu1  ;;  %v469_v15 = vpop.f32.mrf.mxu2 }
 0x1d2   :  { %v446_v16 = vadd.f32 %v445_v14, %v420_v13  ;;  %v517_v19 = vpop.f32.mrf.mxu0 }
 0x1d4   :  { %v470_v18 = vadd.f32 %v469_v15, %v446_v16 }
 0x1d6   :  { %v494_v20 = vadd.f32 %v493_v17, %v470_v18 }
 0x1d8   :  { %v518_v21 = vadd.f32 %v517_v19, %v494_v20 }
 0x1d9   :  { %v539_v22 = vpop.f32.mrf.mxu1 }
 0x1da   :  { %v540_v23 = vadd.f32 %v539_v22, %v518_v21 }
 0x1dc   :  { %542 = vst [vmem:[#allocation7] sm:$0xf] %v540_v23 }
 0x1dd   :  { %553 = dma.vmem_to_hbm [thread:$0]  %s549_s6, 64, %s551_s20, [#allocation4]  }
 0x1de   :  { %647 = dma.done.wait [#allocation4], 64  }
 0x1df   :  { %648 = vsyncadd [#allocation4], 4294967232 }
 0x1e0   :  { %558 = vsyncpa [#allocation3], 1 }
 0x1e1   :  { %559 = vsyncpa [#allocation6], 1 }
 0x1e2   :  { %560 = vsyncpa [#allocation4], 1 }

</bundles_post_ra>
